<compile_context>
chip_gen: v5e
topology: v5e:2x2
jax: 0.10.0
libtpu: 0.0.40
codegen_flags: <defaults>
</compile_context>

<pallas_src>
import functools

import jax
import jax.numpy as jnp
from jax.experimental import pallas as pl
from jax.experimental.pallas import tpu as pltpu

LANE = 128  # TPU lane width; all padded minor dims are multiples of this.


def _unit_type_kernel(x_ref, w_ref, out_ref, *, in_dim):
    """Fused forward: 4 lane-dense matmuls, all intermediates stay in vregs.

    w_ref packs a single (rows, LANE) f32 buffer, zero-padded:
      rows [0, in_dim)                 : block-diag W1   (in_dim, LANE)
      rows [in_dim, in_dim + LANE)     : block-diag W2   (LANE,  LANE)
      rows [.., +LANE)                 : head W3         (LANE,  LANE)
      rows [.., +LANE)                 : head W4         (LANE,  LANE)
      rows [in_dim + 3*LANE .. +4)     : b1, b2, b3, b4  (1, LANE) each
    Zero padding keeps every lane beyond the real widths at exactly 0 through
    all ReLUs / matmuls, so no masking or lane slicing is needed in-kernel; the
    wrapper trims the output.
    """
    o2 = in_dim
    o3 = in_dim + LANE
    o4 = in_dim + 2 * LANE
    ob = in_dim + 3 * LANE

    x = x_ref[...]  # (2, in_dim)

    # per-unit fc1 + relu (all units at once via block-diagonal weight)
    h = jnp.dot(x, w_ref[0:o2, :], preferred_element_type=jnp.float32)
    h = jnp.maximum(h + w_ref[ob + 0:ob + 1, :], 0.0)

    # per-unit fc2 + relu  -> this IS the concatenated units_s, kept in vregs
    h = jnp.dot(h, w_ref[o2:o3, :], preferred_element_type=jnp.float32)
    h = jnp.maximum(h + w_ref[ob + 1:ob + 2, :], 0.0)

    # head fc1 + relu
    h = jnp.dot(h, w_ref[o3:o4, :], preferred_element_type=jnp.float32)
    h = jnp.maximum(h + w_ref[ob + 2:ob + 3, :], 0.0)

    # head fc2 (no relu), lane-dense (2, LANE) store
    h = jnp.dot(h, w_ref[o4:o4 + LANE, :], preferred_element_type=jnp.float32)
    out_ref[...] = (h + w_ref[ob + 3:ob + 4, :]).astype(out_ref.dtype)


def pack_params(params, *, unit_count, feature_count, unit_outs, unit_s_outs):
    """One-time prep (NOT on the per-call hot path): transpose nn.Linear weights,
    block-diagonalize the shared per-unit weights, tile biases, zero-pad every
    minor dim to 128 lanes, and stack everything into one (rows, 128) buffer."""
    w1, b1, w2, b2, w3, b3, w4, b4 = params
    hidden = feature_count // 2
    in_dim = unit_count * feature_count
    h1_dim = unit_count * hidden
    us_dim = unit_count * unit_outs
    h3_dim = us_dim // 2
    assert max(h1_dim, us_dim, h3_dim, unit_s_outs) <= LANE, (
        "hidden widths exceed one lane tile; widen the packing to multiple tiles")

    eye = jnp.eye(unit_count, dtype=jnp.float32)
    w1_blk = jnp.kron(eye, w1.T.astype(jnp.float32))   # (in_dim, h1_dim)
    w2_blk = jnp.kron(eye, w2.T.astype(jnp.float32))   # (h1_dim, us_dim)

    def pad(a, rows):
        a = jnp.asarray(a, jnp.float32)
        buf = jnp.zeros((rows, LANE), jnp.float32)
        return buf.at[:a.shape[0], :a.shape[1]].set(a)

    pieces = [
        pad(w1_blk, in_dim),                           # rows [0, in_dim)
        pad(w2_blk, LANE),                             # rows [in_dim, in_dim+LANE)
        pad(w3.T, LANE),                               # head fc1
        pad(w4.T, LANE),                               # head fc2
        pad(jnp.tile(b1, unit_count)[None, :], 1),     # b1 tiled across units
        pad(jnp.tile(b2, unit_count)[None, :], 1),     # b2 tiled across units
        pad(b3[None, :], 1),
        pad(b4[None, :], 1),
    ]
    total = in_dim + 3 * LANE + 4
    tail = (-total) % 8
    if tail:
        pieces.append(jnp.zeros((tail, LANE), jnp.float32))  # round rows to 8
    return jnp.concatenate(pieces, axis=0)


@functools.partial(jax.jit, static_argnames=("in_dim", "unit_s_outs"))
def unit_type_module_forward(x, packed, *, in_dim, unit_s_outs):
    """Hot path: slice the first two table rows, run the fused kernel (2 DMAs:
    x + packed params), trim the lane-dense output."""
    x2 = x[0:2, :in_dim].astype(jnp.float32)   # mimic x.iloc[0:2, ...]

    kernel = functools.partial(_unit_type_kernel, in_dim=in_dim)
    vmem = pl.BlockSpec(memory_space=pltpu.MemorySpace.VMEM)

    # TODO(synk): if this module is ever called for many tables/rows, add a
    # grid=(num_tables,) axis with dimension_semantics=("parallel",) so v7x's
    # two TensorCores split the batch and the MXU M-dim is actually filled.
    out_pad = pl.pallas_call(
        kernel,
        out_shape=jax.ShapeDtypeStruct((2, LANE), jnp.float32),
        in_specs=[vmem, vmem],
        out_specs=vmem,
    )(x2, packed)

    # Trim lane padding; add the unsqueeze(0) batch dim like the PyTorch module.
    return out_pad[None, :, :unit_s_outs]


def _reference_forward(x, params, *, unit_count, feature_count):
    """Pure-JAX reference mirroring the PyTorch forward, for correctness check."""
    w1, b1, w2, b2, w3, b3, w4, b4 = params
    x2 = x[0:2, :].astype(jnp.float32)
    units_s = []
    for i in range(unit_count):
        off = i * feature_count
        xi = x2[:, off:off + feature_count]
        h = jax.nn.relu(xi @ w1.T + b1)
        u = jax.nn.relu(h @ w2.T + b2)
        units_s.append(u)
    us = jnp.concatenate(units_s, axis=1)
    h = jax.nn.relu(us @ w3.T + b3)
    out = h @ w4.T + b4
    return out[None, :, :]


def _init_params(key, *, unit_count, feature_count, unit_outs, unit_s_outs):
    """Deterministic parameter init (nn.Linear-shaped weights: (out, in))."""
    unit_ins = feature_count
    unit_s_ins = unit_count * unit_outs
    shapes = [
        (unit_ins // 2, unit_ins), (unit_ins // 2,),          # unit_module.fc1
        (unit_outs, unit_ins // 2), (unit_outs,),             # unit_module.fc2
        (unit_s_ins // 2, unit_s_ins), (unit_s_ins // 2,),    # head fc1
        (unit_s_outs, unit_s_ins // 2), (unit_s_outs,),       # head fc2
    ]
    keys = jax.random.split(key, len(shapes))
    return tuple(0.1 * jax.random.normal(k, s, dtype=jnp.float32)
                 for k, s in zip(keys, shapes))


if __name__ == "__main__":
    # Small, forward-consistent shapes.
    unit_count = 4
    feature_count = 16      # == unit_ins
    unit_outs = 8
    unit_s_outs = 8
    in_dim = unit_count * feature_count

    key = jax.random.PRNGKey(0)
    kx, kp = jax.random.split(key)

    # "DataFrame"-like table: 4 rows, unit_count * feature_count columns.
    x = jax.random.normal(kx, (4, in_dim), dtype=jnp.float32)
    params = _init_params(kp, unit_count=unit_count, feature_count=feature_count,
                          unit_outs=unit_outs, unit_s_outs=unit_s_outs)

    # One-time packing (block-diag, transpose, tile, pad) outside the hot path.
    packed = pack_params(params, unit_count=unit_count, feature_count=feature_count,
                         unit_outs=unit_outs, unit_s_outs=unit_s_outs)

    out = unit_type_module_forward(x, packed, in_dim=in_dim, unit_s_outs=unit_s_outs)
    out = jax.block_until_ready(out)

    ref = _reference_forward(x, params, unit_count=unit_count,
                             feature_count=feature_count)

    assert out.shape == (1, 2, unit_s_outs), out.shape
    assert jnp.allclose(out, ref, atol=1e-5, rtol=1e-5), (
        f"max abs err = {jnp.max(jnp.abs(out - ref))}")

    print("KERNEL_OK")
</pallas_src>

<mosaic_0001>
module attributes {stable_mosaic.version = 11 : i64} {
  func.func @_unit_type_kernel(%arg0: memref<2x64xf32, #tpu.memory_space<vmem>>, %arg1: memref<456x128xf32, #tpu.memory_space<vmem>>, %arg2: memref<2x128xf32, #tpu.memory_space<vmem>>) attributes {dimension_semantics = [], scalar_prefetch = 0 : i64, scratch_operands = 0 : i64, tpu.core_type = #tpu.core_type<tc>} {
    %c0 = arith.constant 0 : index
    %c0_0 = arith.constant 0 : index
    %0 = vector.load %arg0[%c0, %c0_0] : memref<2x64xf32, #tpu.memory_space<vmem>>, vector<2x64xf32>
    %c0_1 = arith.constant 0 : index
    %c0_2 = arith.constant 0 : index
    %1 = vector.load %arg1[%c0_1, %c0_2] : memref<456x128xf32, #tpu.memory_space<vmem>>, vector<64x128xf32>
    %cst = arith.constant dense<0.000000e+00> : vector<2x128xf32>
    %2 = tpu.matmul %0, %1, %cst {dimension_numbers = #tpu.dot_dimension_numbers<[1], [0], [0], [1], [0, 0, 1, 1], [], []>} : vector<2x64xf32>, vector<64x128xf32>, vector<2x128xf32> -> vector<2x128xf32>
    %c448 = arith.constant 448 : index
    %c0_3 = arith.constant 0 : index
    %3 = vector.load %arg1[%c448, %c0_3] : memref<456x128xf32, #tpu.memory_space<vmem>>, vector<1x128xf32>
    %4 = vector.broadcast %3 : vector<1x128xf32> to vector<2x128xf32>
    %5 = arith.addf %2, %4 : vector<2x128xf32>
    %cst_4 = arith.constant 0.000000e+00 : f32
    %6 = vector.broadcast %cst_4 : f32 to vector<2x128xf32>
    %7 = arith.maximumf %5, %6 : vector<2x128xf32>
    %c64 = arith.constant 64 : index
    %c0_5 = arith.constant 0 : index
    %8 = vector.load %arg1[%c64, %c0_5] : memref<456x128xf32, #tpu.memory_space<vmem>>, vector<128x128xf32>
    %cst_6 = arith.constant dense<0.000000e+00> : vector<2x128xf32>
    %9 = tpu.matmul %7, %8, %cst_6 {dimension_numbers = #tpu.dot_dimension_numbers<[1], [0], [0], [1], [0, 0, 1, 1], [], []>} : vector<2x128xf32>, vector<128x128xf32>, vector<2x128xf32> -> vector<2x128xf32>
    %c449 = arith.constant 449 : index
    %c0_7 = arith.constant 0 : index
    %10 = vector.load %arg1[%c449, %c0_7] : memref<456x128xf32, #tpu.memory_space<vmem>>, vector<1x128xf32>
    %11 = vector.broadcast %10 : vector<1x128xf32> to vector<2x128xf32>
    %12 = arith.addf %9, %11 : vector<2x128xf32>
    %cst_8 = arith.constant 0.000000e+00 : f32
    %13 = vector.broadcast %cst_8 : f32 to vector<2x128xf32>
    %14 = arith.maximumf %12, %13 : vector<2x128xf32>
    %c192 = arith.constant 192 : index
    %c0_9 = arith.constant 0 : index
    %15 = vector.load %arg1[%c192, %c0_9] : memref<456x128xf32, #tpu.memory_space<vmem>>, vector<128x128xf32>
    %cst_10 = arith.constant dense<0.000000e+00> : vector<2x128xf32>
    %16 = tpu.matmul %14, %15, %cst_10 {dimension_numbers = #tpu.dot_dimension_numbers<[1], [0], [0], [1], [0, 0, 1, 1], [], []>} : vector<2x128xf32>, vector<128x128xf32>, vector<2x128xf32> -> vector<2x128xf32>
    %c450 = arith.constant 450 : index
    %c0_11 = arith.constant 0 : index
    %17 = vector.load %arg1[%c450, %c0_11] : memref<456x128xf32, #tpu.memory_space<vmem>>, vector<1x128xf32>
    %18 = vector.broadcast %17 : vector<1x128xf32> to vector<2x128xf32>
    %19 = arith.addf %16, %18 : vector<2x128xf32>
    %cst_12 = arith.constant 0.000000e+00 : f32
    %20 = vector.broadcast %cst_12 : f32 to vector<2x128xf32>
    %21 = arith.maximumf %19, %20 : vector<2x128xf32>
    %c320 = arith.constant 320 : index
    %c0_13 = arith.constant 0 : index
    %22 = vector.load %arg1[%c320, %c0_13] : memref<456x128xf32, #tpu.memory_space<vmem>>, vector<128x128xf32>
    %cst_14 = arith.constant dense<0.000000e+00> : vector<2x128xf32>
    %23 = tpu.matmul %21, %22, %cst_14 {dimension_numbers = #tpu.dot_dimension_numbers<[1], [0], [0], [1], [0, 0, 1, 1], [], []>} : vector<2x128xf32>, vector<128x128xf32>, vector<2x128xf32> -> vector<2x128xf32>
    %c451 = arith.constant 451 : index
    %c0_15 = arith.constant 0 : index
    %24 = vector.load %arg1[%c451, %c0_15] : memref<456x128xf32, #tpu.memory_space<vmem>>, vector<1x128xf32>
    %25 = vector.broadcast %24 : vector<1x128xf32> to vector<2x128xf32>
    %26 = arith.addf %23, %25 : vector<2x128xf32>
    %c0_16 = arith.constant 0 : index
    %c0_17 = arith.constant 0 : index
    %27 = vector.load %arg2[%c0_16, %c0_17] : memref<2x128xf32, #tpu.memory_space<vmem>>, vector<2x128xf32>
    tpu.vector_store %arg2[%c0_16, %c0_17], %26 {strides = array<i32>} : memref<2x128xf32, #tpu.memory_space<vmem>>, vector<2x128xf32>,
    return
  }
}

</mosaic_0001>

<bundles_post_ra>
// kernel: unit_type_module_forward.1
= control target key start
LH: loop header
LB: loop body
LE: loop exit
PB: predicated region body
PF: predicated region fallthrough
CT: control target
= control target key end

     0   :  { %7 = vsyncpa [#allocation3], 0  ;;  %s219_s12 = smov [#allocation2]   ;;  %s220_s14 = smov 128   ;;  %s246_s0 = inlined_call_operand.vmem [shape: f32[2,64], index: 0, kind: input, shape index: {}]   ;;  %s247_s1 = inlined_call_operand.hbm [shape: f32[456,128], index: 1, kind: input, shape index: {}]   ;;  %s248_s2 = inlined_call_operand.vmem [shape: f32[2,128], index: 2, kind: output, shape index: {}]  }
   0x1   :  { %s14_s11 = sshll.u32 %s247_s1, 4  ;;  %s16_s13 = sshll.u32 %s219_s12, 4  ;;  %s15_s11 = int_to_ptr.hbm [resolvable:$true] %s14_s11  ;;  %s17_s13 = int_to_ptr.vmem [resolvable:$true] %s16_s13 }
   0x2   :  { %s221_s15 = smov 8  }
   0x3   :  { %22 = dma.hbm_to_vmem [thread:$0]  %s15_s11, 7296, %s17_s13, [#allocation3], %s220_s14, %s220_s14, %s221_s15  }
   0x4   :  { %217 = dma.done.wait [#allocation3], 7296  }
   0x5   :  { %218 = vsyncadd [#allocation3], 4294960000  ;;  %v35_v0 = vld [vmem:[#allocation2 + $0x38] sm:$0xff]  ;;  %v34_v1 = vld [vmem:[#allocation2 + $0x30] sm:$0xff]  ;;  %vm38_vm0 = vcmask 523264  }
   0x6   :  { %50 = vmatpush.msra.mxu0 %v35_v0  ;;  %v33_v2 = vld [vmem:[#allocation2 + $0x28] sm:$0xff]  ;;  %v78_v3 = vld [vmem:[#allocation2 + $0xb8] sm:$0xff]  ;;  %v77_v4 = vld [vmem:[#allocation2 + $0xb0] sm:$0xff] }
   0x7   :  { %v32_v5 = vld [vmem:[#allocation2 + $0x20] sm:$0xff]  ;;  %81 = vmatpush.msra.mxu1 %v78_v3  ;;  %v76_v6 = vld [vmem:[#allocation2 + $0xa8] sm:$0xff]  ;;  %v31_v7 = vld [vmem:[#allocation2 + $0x18] sm:$0xff] }
   0x8   :  { %51 = vmatpush.msra.mxu0 %v34_v1  ;;  %v30_v8 = vld [vmem:[#allocation2 + $0x10] sm:$0xff]  ;;  %v75_v9 = vld [vmem:[#allocation2 + $0xa0] sm:$0xff]  ;;  %v74_v10 = vld [vmem:[#allocation2 + $0x98] sm:$0xff] }
   0x9   :  { %82 = vmatpush.msra.mxu1 %v77_v4  ;;  %v29_v11 = vld [vmem:[#allocation2 + $0x8] sm:$0xff]  ;;  %v73_v12 = vld [vmem:[#allocation2 + $0x90] sm:$0xff]  ;;  %v28_v13 = vld [vmem:[#allocation2] sm:$0xff] }
   0xa   :  { %52 = vmatpush.msra.mxu0 %v33_v2  ;;  %v27_v14 = vld [vmem:[%s246_s0] sm:$0x3]  ;;  %v72_v15 = vld [vmem:[#allocation2 + $0x88] sm:$0xff]  ;;  %v70_v17 = vld [vmem:[#allocation2 + $0x78] sm:$0xff] }
   0xb   :  { %83 = vmatpush.msra.mxu1 %v76_v6  ;;  %v71_v16 = vld [vmem:[#allocation2 + $0x80] sm:$0xff]  ;;  %v69_v18 = vld [vmem:[#allocation2 + $0x70] sm:$0xff]  ;;  %v68_v19 = vld [vmem:[#allocation2 + $0x68] sm:$0xff] }
   0xc   :  { %53 = vmatpush.msra.mxu0 %v32_v5  ;;  %v67_v20 = vld [vmem:[#allocation2 + $0x60] sm:$0xff]  ;;  %v66_v21 = vld [vmem:[#allocation2 + $0x58] sm:$0xff]  ;;  %v65_v22 = vld [vmem:[#allocation2 + $0x50] sm:$0xff] }
   0xd   :  { %84 = vmatpush.msra.mxu1 %v75_v9  ;;  %v64_v23 = vld [vmem:[#allocation2 + $0x48] sm:$0xff]  ;;  %v63_v24 = vld [vmem:[#allocation2 + $0x40] sm:$0xff]  ;;  %v117_v25 = vld [vmem:[#allocation2 + $0x138] sm:$0xff] }
   0xe   :  { %54 = vmatpush.msra.mxu0 %v31_v7  ;;  %v116_v26 = vld [vmem:[#allocation2 + $0x130] sm:$0xff]  ;;  %120 = vmatpush.msra.mxu2 %v117_v25  ;;  %v115_v27 = vld [vmem:[#allocation2 + $0x128] sm:$0xff]  ;;  %v114_v28 = vld [vmem:[#allocation2 + $0x120] sm:$0xff] }
   0xf   :  { %85 = vmatpush.msra.mxu1 %v74_v10  ;;  %v113_v29 = vld [vmem:[#allocation2 + $0x118] sm:$0xff]  ;;  %v112_v30 = vld [vmem:[#allocation2 + $0x110] sm:$0xff]  ;;  %v111_v31 = vld [vmem:[#allocation2 + $0x108] sm:$0xff] }
  0x10   :  { %55 = vmatpush.msra.mxu0 %v30_v8  ;;  %121 = vmatpush.msra.mxu2 %v116_v26  ;;  %v110_v32 = vld [vmem:[#allocation2 + $0x100] sm:$0xff]  ;;  %v109_v33 = vld [vmem:[#allocation2 + $0xf8] sm:$0xff]  ;;  %v108_v34 = vld [vmem:[#allocation2 + $0xf0] sm:$0xff] }
  0x11   :  { %86 = vmatpush.msra.mxu1 %v73_v12  ;;  %v107_v35 = vld [vmem:[#allocation2 + $0xe8] sm:$0xff]  ;;  %v106_v36 = vld [vmem:[#allocation2 + $0xe0] sm:$0xff]  ;;  %v105_v37 = vld [vmem:[#allocation2 + $0xd8] sm:$0xff] }
  0x12   :  { %56 = vmatpush.msra.mxu0 %v29_v11  ;;  %122 = vmatpush.msra.mxu2 %v115_v27  ;;  %v189_v38 = vld [vmem:[#allocation2 + $0x1c0] ss:$0 sm:$0xff]  ;;  %v104_v42 = vld [vmem:[#allocation2 + $0xd0] sm:$0xff]  ;;  %v103_v43 = vld [vmem:[#allocation2 + $0xc8] sm:$0xff] }
  0x13   :  { %87 = vmatpush.msra.mxu1 %v72_v15  ;;  %v102_v44 = vld [vmem:[#allocation2 + $0xc0] sm:$0xff]  ;;  %v156_v45 = vld [vmem:[#allocation2 + $0x1b8] sm:$0xff]  ;;  %v155_v46 = vld [vmem:[#allocation2 + $0x1b0] sm:$0xff] }
  0x14   :  { %57 = vmatpush.msra.mxu0 %v28_v13  ;;  %123 = vmatpush.msra.mxu2 %v114_v28  ;;  %v154_v47 = vld [vmem:[#allocation2 + $0x1a8] sm:$0xff]  ;;  %v153_v48 = vld [vmem:[#allocation2 + $0x1a0] sm:$0xff]  ;;  %v152_v49 = vld [vmem:[#allocation2 + $0x198] sm:$0xff] }
  0x15   :  { %185 = vmatmul.msk.f32.vlgmr.msra.gmra.mxu0 %vm38_vm0, %v27_v14  ;;  %88 = vmatpush.msra.mxu1 %v71_v16  ;;  %v151_v50 = vld [vmem:[#allocation2 + $0x190] sm:$0xff]  ;;  %v150_v51 = vld [vmem:[#allocation2 + $0x188] sm:$0xff]  ;;  %v149_v52 = vld [vmem:[#allocation2 + $0x180] sm:$0xff] }
  0x16   :  { %124 = vmatpush.msra.mxu2 %v113_v29  ;;  %159 = vmatpush.msra.mxu3 %v156_v45  ;;  %v148_v53 = vld [vmem:[#allocation2 + $0x178] sm:$0xff]  ;;  %v147_v54 = vld [vmem:[#allocation2 + $0x170] sm:$0xff]  ;;  %v146_v55 = vld [vmem:[#allocation2 + $0x168] sm:$0xff] }
  0x17   :  { %89 = vmatpush.msra.mxu1 %v70_v17  ;;  %v145_v56 = vld [vmem:[#allocation2 + $0x160] sm:$0xff]  ;;  %v144_v57 = vld [vmem:[#allocation2 + $0x158] sm:$0xff]  ;;  %v143_v62 = vld [vmem:[#allocation2 + $0x150] sm:$0xff] }
  0x18   :  { %125 = vmatpush.msra.mxu2 %v112_v30  ;;  %160 = vmatpush.msra.mxu3 %v155_v46  ;;  %v190_v58 = vld [vmem:[#allocation2 + $0x1c1] ss:$0 sm:$0xff]  ;;  %v142_v63 = vld [vmem:[#allocation2 + $0x148] sm:$0xff]  ;;  %v191_v1 = vld [vmem:[#allocation2 + $0x1c2] ss:$0 sm:$0xff] }
  0x19   :  { %90 = vmatpush.msra.mxu1 %v69_v18  ;;  %v141_v0 = vld [vmem:[#allocation2 + $0x140] sm:$0xff] }
  0x1a   :  { %126 = vmatpush.msra.mxu2 %v111_v31  ;;  %161 = vmatpush.msra.mxu3 %v154_v47  ;;  %v192_v5 = vld [vmem:[#allocation2 + $0x1c3] ss:$0 sm:$0xff] }
  0x1b   :  { %91 = vmatpush.msra.mxu1 %v68_v19 }
  0x1c   :  { %127 = vmatpush.msra.mxu2 %v110_v32  ;;  %162 = vmatpush.msra.mxu3 %v153_v48 }
  0x1d   :  { %92 = vmatpush.msra.mxu1 %v67_v20 }
  0x1e   :  { %128 = vmatpush.msra.mxu2 %v109_v33  ;;  %163 = vmatpush.msra.mxu3 %v152_v49 }
  0x1f   :  { %93 = vmatpush.msra.mxu1 %v66_v21 }
  0x20   :  { %129 = vmatpush.msra.mxu2 %v108_v34  ;;  %164 = vmatpush.msra.mxu3 %v151_v50 }
  0x21   :  { %94 = vmatpush.msra.mxu1 %v65_v22 }
  0x22   :  { %130 = vmatpush.msra.mxu2 %v107_v35  ;;  %165 = vmatpush.msra.mxu3 %v150_v51 }
  0x23   :  { %95 = vmatpush.msra.mxu1 %v64_v23 }
  0x24   :  { %131 = vmatpush.msra.mxu2 %v106_v36  ;;  %166 = vmatpush.msra.mxu3 %v149_v52 }
  0x25   :  { %96 = vmatpush.msra.mxu1 %v63_v24 }
  0x26   :  { %132 = vmatpush.msra.mxu2 %v105_v37  ;;  %167 = vmatpush.msra.mxu3 %v148_v53 }
  0x28   :  { %133 = vmatpush.msra.mxu2 %v104_v42  ;;  %168 = vmatpush.msra.mxu3 %v147_v54 }
  0x2a   :  { %134 = vmatpush.msra.mxu2 %v103_v43  ;;  %169 = vmatpush.msra.mxu3 %v146_v55 }
  0x2c   :  { %135 = vmatpush.msra.mxu2 %v102_v44  ;;  %170 = vmatpush.msra.mxu3 %v145_v56 }
  0x2e   :  { %171 = vmatpush.msra.mxu3 %v144_v57 }
  0x30   :  { %172 = vmatpush.msra.mxu3 %v143_v62 }
  0x32   :  { %173 = vmatpush.msra.mxu3 %v142_v63 }
  0x34   :  { %174 = vmatpush.msra.mxu3 %v141_v0 }
  0x92   :  { %v59_v39 = vpop.f32.mrf.mxu0 }
  0x93   :  { %v60_v40 = vadd.f32 %v189_v38, %v59_v39 }
  0x95   :  { %v62_v41 = vmax.f32 %v60_v40, 0.0 }
  0x97   :  { %97 = vmatmul.f32.vlgmr.msra.gmra.mxu1 %v62_v41 }
 0x114   :  { %v98_v59 = vpop.f32.mrf.mxu1 }
 0x115   :  { %v99_v60 = vadd.f32 %v190_v58, %v98_v59 }
 0x117   :  { %v101_v61 = vmax.f32 %v99_v60, 0.0 }
 0x119   :  { %136 = vmatmul.f32.vlgmr.msra.gmra.mxu2 %v101_v61 }
 0x19c   :  { %v137_v2 = vpop.f32.mrf.mxu2 }
 0x19d   :  { %v138_v3 = vadd.f32 %v191_v1, %v137_v2 }
 0x19f   :  { %v140_v4 = vmax.f32 %v138_v3, 0.0 }
 0x1a1   :  { %175 = vmatmul.f32.vlgmr.msra.gmra.mxu3 %v140_v4 }
 0x224   :  { %v176_v6 = vpop.f32.mrf.mxu3 }
 0x225   :  { %v177_v7 = vadd.f32 %v192_v5, %v176_v6 }
 0x227   :  { %179 = vst [vmem:[%s248_s2] sm:$0x3] %v177_v7 }
 0x228   :  { %184 = vsyncpa [#allocation3], 1 }

</bundles_post_ra>
